<compile_context>
chip_gen: v7x
topology: tpu7x:2x2x1
jax: 0.10.0
libtpu: 0.0.40
codegen_flags: <defaults>
</compile_context>

<pallas_src>
import math

import jax
import jax.numpy as jnp
from jax.experimental import pallas as pl
from jax.experimental.pallas import tpu as pltpu


def _build_pe(max_len: int, d_model: int) -> jnp.ndarray:
    """Deterministic sinusoidal PE table, shape (max_len, d_model), float32."""
    position = jnp.arange(0, max_len, dtype=jnp.float32)[:, None]            # (L, 1)
    div_term = jnp.exp(
        jnp.arange(0, d_model, 2, dtype=jnp.float32) * (-math.log(10000.0) / d_model)
    )                                                                         # (D/2,)
    angles = position * div_term[None, :]                                     # (L, D/2)
    pe = jnp.zeros((max_len, d_model), dtype=jnp.float32)
    pe = pe.at[:, 0::2].set(jnp.sin(angles))
    pe = pe.at[:, 1::2].set(jnp.cos(angles))
    return pe


def _choose_tiles(n, t, d, itemsize, sub, target_bytes):
    """Pick (nb, tt) for a (nb, tt, d) block near target_bytes.

    Constraints: tt (2nd-to-last block dim) must be a multiple of the sublane
    count `sub` OR equal to the full T; the last dim is always the full D; the
    leading nb has no tiling constraint.  No divisibility of the array dims is
    required -- the grid uses cdiv with ragged edge blocks.
    """
    row_bytes = d * itemsize
    slab_bytes = t * row_bytes                      # one batch row, full time
    if slab_bytes <= target_bytes:
        tt = t                                      # full T (any value allowed)
        nb = max(1, min(n, target_bytes // max(slab_bytes, 1)))
    else:
        nb = 1
        tt = max(sub, (target_bytes // row_bytes) // sub * sub)
        if tt >= t:
            tt = t
    return nb, tt


def _pe_kernel(x_ref, pe_ref, len_ref, o_ref):
    """x_ref/o_ref: (Nb, Tt, D); pe_ref: (Nb, 1, D); len_ref: (Nb, 1, 1) int32."""
    tt = x_ref.shape[1]
    t0 = pl.program_id(1) * tt                               # global time offset
    # Sublane iota in x's own layout; compare + select fuse vreg-by-vreg (VPU
    # filler fully hidden under the HBM DMA).
    t_idx = jax.lax.broadcasted_iota(jnp.int32, x_ref.shape, 1) + t0
    mask = t_idx < len_ref[...]                              # (Nb,1,1) broadcasts
    x = x_ref[...]
    o_ref[...] = jnp.where(mask, x + pe_ref[...], x).astype(o_ref.dtype)


def hybrid_pe_forward(x, lengths, pe_table, *, target_block_bytes=6 * 1024 * 1024):
    """x: (N, T, D); lengths: (N,) int; pe_table: (max_len, D) float32."""
    n, t, d = x.shape
    if n > pe_table.shape[0]:
        raise ValueError(f"batch size {n} exceeds pe table max_len {pe_table.shape[0]}")
    if lengths.shape != (n,):
        raise ValueError("lengths must have shape (N,)")

    itemsize = jnp.dtype(x.dtype).itemsize
    sub = {4: 8, 2: 16, 1: 32}[itemsize]          # sublane multiple for x dtype
    nb, tt = _choose_tiles(n, t, d, itemsize, sub, target_block_bytes)

    # pe[:N] (batch-indexed, as in the PyTorch module) and per-row lengths; both
    # are resident in VMEM across the whole time axis (index depends only on i).
    pe = pe_table[:n, :].astype(x.dtype)[:, None, :]     # (N, 1, D)
    lens = lengths.astype(jnp.int32)[:, None, None]      # (N, 1, 1)

    grid = (pl.cdiv(n, nb), pl.cdiv(t, tt))              # ragged edge blocks OK

    # VMEM: x + out double-buffered (4x block) + pe/lens residents + headroom
    # for in-kernel temps.  Capped well under v7x's 64 MiB physical VMEM/TC.
    block_bytes = nb * tt * d * itemsize
    vmem_limit = int(min(48 * 1024 * 1024,
                         max(16 * 1024 * 1024, 5 * block_bytes + 4 * 1024 * 1024)))

    cost = pl.CostEstimate(
        flops=2 * n * t * d,
        transcendentals=0,
        bytes_accessed=2 * n * t * d * itemsize + n * d * itemsize + n * 4,
    )

    return pl.pallas_call(
        _pe_kernel,
        out_shape=jax.ShapeDtypeStruct((n, t, d), x.dtype),
        grid=grid,
        in_specs=[
            pl.BlockSpec((nb, tt, d), lambda i, j: (i, j, 0)),   # x tile
            pl.BlockSpec((nb, 1, d), lambda i, j: (i, 0, 0)),    # pe rows (resident over j)
            pl.BlockSpec((nb, 1, 1), lambda i, j: (i, 0, 0)),    # lengths (resident over j)
        ],
        out_specs=pl.BlockSpec((nb, tt, d), lambda i, j: (i, j, 0)),
        compiler_params=pltpu.CompilerParams(
            dimension_semantics=("parallel", "parallel"),
            vmem_limit_bytes=vmem_limit,
        ),
        cost_estimate=cost,
    )(x, pe, lens)


def hybrid_pe_reference(x, lengths, pe_table):
    """Pure-JAX reference matching the PyTorch forward exactly."""
    n, t, d = x.shape
    mask = (jnp.arange(t)[None, :] < lengths[:, None]).astype(x.dtype)       # (N, T)
    pe = pe_table[:n, :].astype(x.dtype)                                     # (N, D)
    return x + pe[:, None, :] * mask[:, :, None]


if __name__ == "__main__":
    key = jax.random.PRNGKey(0)
    MAX_LEN = 64

    # (N, T, D, dtype, target_block_bytes) -- small deterministic shapes covering:
    # aligned single-block, full-T/full-D unaligned block, ragged batch tiles,
    # ragged time tiles with D=96 (masked lane stores), and a bf16 ragged case.
    cases = [
        (4, 16, 128, jnp.float32, 6 * 1024 * 1024),
        (6, 20, 32, jnp.float32, 6 * 1024 * 1024),
        (10, 24, 64, jnp.float32, 4 * 24 * 64 * 4),
        (16, 40, 96, jnp.float32, 8 * 1024),
        (4, 40, 96, jnp.bfloat16, 4 * 1024),
    ]

    for idx, (N, T, D, dtype, tgt) in enumerate(cases):
        kx, kl, key = jax.random.split(key, 3)
        x = jax.random.normal(kx, (N, T, D), dtype=jnp.float32).astype(dtype)
        lengths = jax.random.randint(kl, (N,), minval=1, maxval=T + 1, dtype=jnp.int32)
        pe_table = _build_pe(MAX_LEN, D)

        out = jax.block_until_ready(
            hybrid_pe_forward(x, lengths, pe_table, target_block_bytes=tgt)
        )
        ref = hybrid_pe_reference(x, lengths, pe_table)
        assert out.shape == (N, T, D) and out.dtype == x.dtype
        tol = 1e-6 if dtype == jnp.float32 else 1e-2
        assert jnp.allclose(out.astype(jnp.float32), ref.astype(jnp.float32),
                            atol=tol, rtol=tol), f"mismatch in case {idx}"

    print("KERNEL_OK")
</pallas_src>

<mosaic_0001>
module attributes {stable_mosaic.version = 11 : i64} {
  func.func @_pe_kernel(%arg0: i32, %arg1: i32, %arg2: memref<4x16x128xf32, #tpu.memory_space<vmem>>, %arg3: memref<4x1x128xf32, #tpu.memory_space<vmem>>, %arg4: memref<4x1x1xi32, #tpu.memory_space<vmem>>, %arg5: memref<4x16x128xf32, #tpu.memory_space<vmem>>) attributes {dimension_semantics = [#tpu.dimension_semantics<parallel>, #tpu.dimension_semantics<parallel>], iteration_bounds = array<i64: 1, 1>, scalar_prefetch = 0 : i64, scratch_operands = 0 : i64, tpu.core_type = #tpu.core_type<tc>, window_params = [{transform_indices = @transform_0, window_bounds = array<i64: 4, 16, 128>}, {transform_indices = @transform_1, window_bounds = array<i64: 4, 1, 128>}, {transform_indices = @transform_2, window_bounds = array<i64: 4, 1, 1>}, {transform_indices = @transform_3, window_bounds = array<i64: 4, 16, 128>}]} {
    %c16_i32 = arith.constant 16 : i32
    %0 = arith.muli %arg1, %c16_i32 : i32
    %1 = tpu.iota {dimensions = array<i32: 1>} : vector<4x16x128xi32>
    %2 = vector.broadcast %0 : i32 to vector<4x16x128xi32>
    %3 = arith.addi %1, %2 : vector<4x16x128xi32>
    %c0 = arith.constant 0 : index
    %c0_0 = arith.constant 0 : index
    %c0_1 = arith.constant 0 : index
    %4 = vector.load %arg4[%c0, %c0_0, %c0_1] : memref<4x1x1xi32, #tpu.memory_space<vmem>>, vector<4x1x1xi32>
    %5 = vector.broadcast %4 : vector<4x1x1xi32> to vector<4x16x128xi32>
    %6 = arith.cmpi slt, %3, %5 : vector<4x16x128xi32>
    %c0_2 = arith.constant 0 : index
    %c0_3 = arith.constant 0 : index
    %c0_4 = arith.constant 0 : index
    %7 = vector.load %arg2[%c0_2, %c0_3, %c0_4] : memref<4x16x128xf32, #tpu.memory_space<vmem>>, vector<4x16x128xf32>
    %c0_5 = arith.constant 0 : index
    %c0_6 = arith.constant 0 : index
    %c0_7 = arith.constant 0 : index
    %8 = vector.load %arg3[%c0_5, %c0_6, %c0_7] : memref<4x1x128xf32, #tpu.memory_space<vmem>>, vector<4x1x128xf32>
    %9 = vector.broadcast %8 : vector<4x1x128xf32> to vector<4x16x128xf32>
    %10 = arith.addf %7, %9 : vector<4x16x128xf32>
    %11 = arith.select %6, %10, %7 : vector<4x16x128xi1>, vector<4x16x128xf32>
    %c0_8 = arith.constant 0 : index
    %c0_9 = arith.constant 0 : index
    %c0_10 = arith.constant 0 : index
    %12 = vector.load %arg5[%c0_8, %c0_9, %c0_10] : memref<4x16x128xf32, #tpu.memory_space<vmem>>, vector<4x16x128xf32>
    tpu.vector_store %arg5[%c0_8, %c0_9, %c0_10], %11 {strides = array<i32>} : memref<4x16x128xf32, #tpu.memory_space<vmem>>, vector<4x16x128xf32>,
    return
  }
  func.func @transform_0(%arg0: i32, %arg1: i32) -> (i32, i32, i32) {
    %c0_i32 = arith.constant 0 : i32
    %c0_i32_0 = arith.constant 0 : i32
    return %arg0, %arg1, %c0_i32 : i32, i32, i32
  }
  func.func @transform_1(%arg0: i32, %arg1: i32) -> (i32, i32, i32) {
    %c0_i32 = arith.constant 0 : i32
    %c0_i32_0 = arith.constant 0 : i32
    %c0_i32_1 = arith.constant 0 : i32
    return %arg0, %c0_i32, %c0_i32_0 : i32, i32, i32
  }
  func.func @transform_2(%arg0: i32, %arg1: i32) -> (i32, i32, i32) {
    %c0_i32 = arith.constant 0 : i32
    %c0_i32_0 = arith.constant 0 : i32
    %c0_i32_1 = arith.constant 0 : i32
    return %arg0, %c0_i32, %c0_i32_0 : i32, i32, i32
  }
  func.func @transform_3(%arg0: i32, %arg1: i32) -> (i32, i32, i32) {
    %c0_i32 = arith.constant 0 : i32
    %c0_i32_0 = arith.constant 0 : i32
    return %arg0, %arg1, %c0_i32 : i32, i32, i32
  }
}

</mosaic_0001>

<bundles_post_ra>
// kernel: tpu_custom_call.1
= control target key start
LH: loop header
LB: loop body
LE: loop exit
PB: predicated region body
PF: predicated region fallthrough
CT: control target
= control target key end

     0   :  { %8 = vsyncpa [#allocation3], 0  ;;  %s295_s0 = inlined_call_operand.hbm [shape: f32[4,16,128], index: 0, kind: input, shape index: {}]   ;;  %s296_s1 = inlined_call_operand.vmem [shape: f32[4,1,128], index: 1, kind: input, shape index: {}]   ;;  %s297_s2 = inlined_call_operand.vmem [shape: s32[4,1,1], index: 2, kind: input, shape index: {}]   ;;  %s298_s3 = inlined_call_operand.hbm [shape: f32[4,16,128], index: 3, kind: output, shape index: {}]  }
   0x1   :  { %9 = vsyncpa [#allocation4], 0  ;;  %s216_s12 = smov [#allocation2]   ;;  %s168_s16 = scalar_lea.hbm %s295_s0, 1024 }
   0x2   :  { %s15_s13 = sshll.u32 %s216_s12, 4  ;;  %p169_p0 = scmp.ne.s32.totalorder %s295_s0, %s168_s16  ;;  %s16_s13 = int_to_ptr.vmem [resolvable:$true] %s15_s13 }
   0x3   :  { %p172_p1 = scmp.lt.u32.totalorder %s168_s16, %s295_s0 }
   0x5   :  { %p174_p2 = pnand %p172_p1, %p169_p0 }
   0x7   :  { %177 = shalt.err (!%p174_p2)
}
   0x8   :  { %s178_s21 = scalar_lea.vmem %s16_s13, 1024  ;;  %p183_p4 = scmp.lt.s32.totalorder %s16_s13, %s16_s13 }
   0x9   :  { %p179_p3 = scmp.ne.s32.totalorder %s16_s13, %s178_s21  ;;  %p184_p5 = scmp.lt.s32.totalorder %s178_s21, %s178_s21 }
   0xb   :  { %p185_p6 = por %p184_p5, %p183_p4 }
   0xd   :  { %p186_p7 = pnand %p185_p6, %p179_p3 }
   0xf   :  { %189 = shalt.err (!%p186_p7)
}
  0x10   :  { %s217_s22 = smov 128   ;;  %s218_s23 = smov 8  }
  0x11   :  { %21 = dma.hbm_to_vmem [thread:$0]  %s295_s0, 1024, %s16_s13, [#allocation3], %s217_s22, %s217_s22, %s218_s23  }
  0x12   :  { %212 = dma.done.wait [#allocation3], 1024  }
  0x13   :  { %213 = vsyncadd [#allocation3], 4294966272  ;;  %v219_v0 = vmov 0   ;;  %v155_v1 = vld [vmem:[%s297_s2 + $0x2] ss:$0 sm:$0xff]  ;;  %v30_v5 = vlaneseq  ;;  %v81_v8 = vld [vmem:[#allocation2 + $0x28] sm:$0xff] }
  0x14   :  { %167 = vset.pattern.permute.xlu1 %v219_v0  ;;  %166 = vset.pattern.permute.xlu0 %v219_v0  ;;  %v153_v2 = vld [vmem:[%s297_s2] ss:$0 sm:$0xff]  ;;  %v156_v3 = vld [vmem:[%s297_s2 + $0x3] ss:$0 sm:$0xff]  ;;  %v154_v4 = vld [vmem:[%s297_s2 + $0x1] ss:$0 sm:$0xff] }
  0x15   :  { %63 = vperm.xlu1 %167, %v155_v1   ;;  %57 = vperm.xlu0 %166, %v153_v2   ;;  %v31_v6 = vshrl.u32 %v30_v5, 7  ;;  %v80_v7 = vld [vmem:[#allocation2 + $0x20] sm:$0xff]  ;;  %v77_v11 = vld [vmem:[#allocation2 + $0x8] sm:$0xff]  ;;  %v82_v13 = vld [vmem:[#allocation2 + $0x30] sm:$0xff]  ;;  %s220_s13 = smov [#allocation5]  }
  0x16   :  { %v159_v9 = vld [vmem:[%s296_s1 + $0x2] ss:$0 sm:$0xff]  ;;  %v157_v12 = vld [vmem:[%s296_s1] ss:$0 sm:$0xff]  ;;  %v83_v14 = vld [vmem:[#allocation2 + $0x38] sm:$0xff] }
  0x17   :  { %v76_v10 = vld [vmem:[#allocation2] sm:$0xff]  ;;  %v32_v16 = vadd.s32 8, %v31_v6  ;;  %v78_v17 = vld [vmem:[#allocation2 + $0x10] sm:$0xff]  ;;  %v79_v18 = vld [vmem:[#allocation2 + $0x18] sm:$0xff]  ;;  %v116_v20 = vadd.f32 %v159_v9, %v80_v7  ;;  %v117_v21 = vadd.f32 %v159_v9, %v81_v8  ;;  %v113_v23 = vadd.f32 %v157_v12, %v77_v11 }
  0x18   :  { %v160_v15 = vld [vmem:[%s296_s1 + $0x3] ss:$0 sm:$0xff]  ;;  %v158_v19 = vld [vmem:[%s296_s1 + $0x1] ss:$0 sm:$0xff]  ;;  %v112_v22 = vadd.f32 %v157_v12, %v76_v10  ;;  %s141_s1 = sshll.u32 %s220_s13, 4  ;;  %s142_s1 = int_to_ptr.vmem [resolvable:$true] %s141_s1 }
  0x19   :  { %66 = vperm.xlu1 %167, %v156_v3   ;;  %60 = vperm.xlu0 %166, %v154_v4   ;;  %v118_v26 = vadd.f32 %v160_v15, %v82_v13  ;;  %v119_v27 = vadd.f32 %v160_v15, %v83_v14  ;;  %v114_v28 = vadd.f32 %v158_v19, %v78_v17  ;;  %s190_s14 = scalar_lea.vmem %s142_s1, 1024  ;;  %p195_p9 = scmp.lt.s32.totalorder %s142_s1, %s142_s1 }
  0x1a   :  { %v115_v29 = vadd.f32 %v158_v19, %v79_v18  ;;  %p191_p8 = scmp.ne.s32.totalorder %s142_s1, %s190_s14  ;;  %p196_p10 = scmp.lt.s32.totalorder %s190_s14, %s190_s14 }
  0x1c   :  { %p197_p11 = por %p196_p10, %p195_p9 }
  0x1e   :  { %p198_p12 = pnand %p197_p11, %p191_p8 }
  0x94   :  { %v64_v24 = vpop.permute.xlu1 %63  ;;  %v58_v25 = vpop.permute.xlu0 %57 }
  0x95   :  { %vm72_vm0 = vcmp.lt.s32.totalorder %v31_v6, %v64_v24  ;;  %vm73_vm1 = vcmp.lt.s32.totalorder %v32_v16, %v64_v24  ;;  %vm68_vm2 = vcmp.lt.s32.totalorder %v31_v6, %v58_v25  ;;  %vm69_vm3 = vcmp.lt.s32.totalorder %v32_v16, %v58_v25 }
  0x96   :  { %v124_v30 = vsel %vm72_vm0, %v116_v20, %v80_v7  ;;  %v125_v31 = vsel %vm73_vm1, %v117_v21, %v81_v8  ;;  %v120_v32 = vsel %vm68_vm2, %v112_v22, %v76_v10  ;;  %v121_v33 = vsel %vm69_vm3, %v113_v23, %v77_v11 }
  0x97   :  { %132 = vst [vmem:[#allocation5 + $0x20] sm:$0xff] %v124_v30  ;;  %133 = vst [vmem:[#allocation5 + $0x28] sm:$0xff] %v125_v31 }
  0x98   :  { %128 = vst [vmem:[#allocation5] sm:$0xff] %v120_v32  ;;  %129 = vst [vmem:[#allocation5 + $0x8] sm:$0xff] %v121_v33  ;;  %v67_v34 = vpop.permute.xlu1 %66  ;;  %v61_v35 = vpop.permute.xlu0 %60 }
  0x99   :  { %vm74_vm4 = vcmp.lt.s32.totalorder %v31_v6, %v67_v34  ;;  %vm75_vm5 = vcmp.lt.s32.totalorder %v32_v16, %v67_v34  ;;  %vm70_vm6 = vcmp.lt.s32.totalorder %v31_v6, %v61_v35  ;;  %vm71_vm7 = vcmp.lt.s32.totalorder %v32_v16, %v61_v35 }
  0x9a   :  { %v126_v36 = vsel %vm74_vm4, %v118_v26, %v82_v13  ;;  %v127_v37 = vsel %vm75_vm5, %v119_v27, %v83_v14  ;;  %v122_v38 = vsel %vm70_vm6, %v114_v28, %v78_v17  ;;  %v123_v39 = vsel %vm71_vm7, %v115_v29, %v79_v18 }
  0x9b   :  { %134 = vst [vmem:[#allocation5 + $0x30] sm:$0xff] %v126_v36  ;;  %135 = vst [vmem:[#allocation5 + $0x38] sm:$0xff] %v127_v37 }
  0x9c   :  { %130 = vst [vmem:[#allocation5 + $0x10] sm:$0xff] %v122_v38  ;;  %131 = vst [vmem:[#allocation5 + $0x18] sm:$0xff] %v123_v39 }
  0x9d   :  { %201 = shalt.err (!%p198_p12)
}
  0x9e   :  { %s202_s17 = scalar_lea.hbm %s298_s3, 1024 }
  0x9f   :  { %p203_p13 = scmp.ne.s32.totalorder %s298_s3, %s202_s17  ;;  %p206_p0 = scmp.lt.u32.totalorder %s202_s17, %s298_s3 }
  0xa1   :  { %p208_p1 = pnand %p206_p0, %p203_p13 }
  0xa3   :  { %211 = shalt.err (!%p208_p1)
}
  0xa4   :  { %147 = dma.vmem_to_hbm [thread:$0]  %s142_s1, 1024, %s298_s3, [#allocation4], %s217_s22, %s217_s22, %s218_s23  }
  0xa5   :  { %214 = dma.done.wait [#allocation4], 1024  }
  0xa6   :  { %215 = vsyncadd [#allocation4], 4294966272 }
  0xa7   :  { %151 = vsyncpa [#allocation3], 1 }
  0xa8   :  { %152 = vsyncpa [#allocation4], 1 }

</bundles_post_ra>
